<compile_context>
chip_gen: v6e
topology: v6e:2x2x1
jax: 0.10.0
libtpu: 0.0.40
codegen_flags: <defaults>
</compile_context>

<pallas_src>
import functools
import math

import jax
import jax.numpy as jnp
from jax.experimental import pallas as pl
from jax.experimental.pallas import tpu as pltpu


def _attn_kernel(has_past, scale, past_len, kv_block, x_ref, *refs):
    """Grid step = (batch block b, past-KV chunk kv).  Online softmax over kv."""
    if has_past:
        pk_ref, pv_ref = refs[0], refs[1]
        refs = refs[2:]
    (wq_ref, wk_ref, wv_ref, wo_ref,
     bq_ref, bk_ref, bv_ref, bo_ref,
     out_ref, kn_ref, vn_ref,
     q_sc, m_sc, l_sc, acc_sc) = refs

    bb, s, d = x_ref.shape
    kv = pl.program_id(1)
    nkv = pl.num_programs(1)
    cdt = q_sc.dtype  # compute (MXU operand) dtype

    # ---- kv == 0: QKV projections + contribution of the NEW rows. -------------
    @pl.when(kv == 0)
    def _init():
        x2d = x_ref[...].astype(cdt).reshape(bb * s, d)      # cast per-tile
        q = jnp.dot(x2d, wq_ref[...], preferred_element_type=jnp.float32) + bq_ref[...]
        k = jnp.dot(x2d, wk_ref[...], preferred_element_type=jnp.float32) + bk_ref[...]
        v = jnp.dot(x2d, wv_ref[...], preferred_element_type=jnp.float32) + bv_ref[...]

        # Emit only the NEW K/V rows; cache assembly happens outside the kernel.
        kn_ref[...] = k.reshape(bb, s, d).astype(kn_ref.dtype)
        vn_ref[...] = v.reshape(bb, s, d).astype(vn_ref.dtype)

        q3 = (q * scale).reshape(bb, s, d).astype(cdt)        # fold 1/sqrt(D) into q
        k3 = k.reshape(bb, s, d).astype(cdt)
        v3 = v.reshape(bb, s, d).astype(cdt)
        q_sc[...] = q3

        # Batched contraction over the LAST dims (no explicit transpose).
        s_new = jnp.einsum("bqd,bkd->bqk", q3, k3,
                           preferred_element_type=jnp.float32)
        m0 = jnp.max(s_new, axis=-1, keepdims=True)
        e0 = jnp.exp(s_new - m0)
        m_sc[...] = m0
        l_sc[...] = jnp.sum(e0, axis=-1, keepdims=True)
        acc_sc[...] = jnp.einsum("bqk,bkd->bqd", e0.astype(cdt), v3,
                                 preferred_element_type=jnp.float32)

    # ---- Every kv step: fold one streamed chunk of the PAST cache. -----------
    if has_past:
        q3 = q_sc[...]
        pk = pk_ref[...].astype(cdt)     # f32 HBM tile -> bf16 in VMEM
        pv = pv_ref[...].astype(cdt)
        s_p = jnp.einsum("bqd,bkd->bqk", q3, pk,
                         preferred_element_type=jnp.float32)
        if past_len % kv_block != 0:
            # Ragged final chunk: mask out-of-range columns / rows (trace-time gate).
            base = kv * kv_block
            col = jax.lax.broadcasted_iota(jnp.int32, (1, 1, kv_block), 2) + base
            s_p = jnp.where(col < past_len, s_p, -jnp.inf)
            row = jax.lax.broadcasted_iota(jnp.int32, (1, kv_block, 1), 1) + base
            pv = jnp.where(row < past_len, pv, jnp.zeros_like(pv))

        m_prev = m_sc[...]
        m_new = jnp.maximum(m_prev, jnp.max(s_p, axis=-1, keepdims=True))
        alpha = jnp.exp(m_prev - m_new)
        e_p = jnp.exp(s_p - m_new)
        l_sc[...] = alpha * l_sc[...] + jnp.sum(e_p, axis=-1, keepdims=True)
        acc_sc[...] = alpha * acc_sc[...] + jnp.einsum(
            "bqk,bkd->bqd", e_p.astype(cdt), pv,
            preferred_element_type=jnp.float32)
        m_sc[...] = m_new

    # ---- kv == last: normalize, output projection, store. --------------------
    @pl.when(kv == nkv - 1)
    def _finalize():
        # Normalize the (s, d) context instead of the (s, T) probabilities;
        # approx reciprocal goes to the otherwise-idle EUP slot.
        ctx = acc_sc[...] * pl.reciprocal(l_sc[...], approx=True)
        out = (jnp.dot(ctx.astype(cdt).reshape(bb * s, d), wo_ref[...],
                       preferred_element_type=jnp.float32) + bo_ref[...])
        out_ref[...] = out.reshape(bb, s, d).astype(out_ref.dtype)


def _pick_block_b(B, S):
    """Batch folding: target ~256 MXU rows, but keep >=2 grid steps on the
    'parallel' axis when B allows (so v7x megacore can shard it)."""
    divisors = [d for d in range(1, B + 1) if B % d == 0]
    candidates = [d for d in divisors if B // d >= 2] or divisors
    for d in candidates:
        if d * S >= 256:
            return d
    return candidates[-1]


def _pick_kv_block(P, block_b, D, itemsize=4):
    """Past-KV chunk length: bounded VMEM (2 tensors x 2 buffers), multiple of 8."""
    per_row = max(1, block_b * D * itemsize)
    budget = 8 * 1024 * 1024
    kv = budget // (4 * per_row)
    kv = max(8, min(512, (kv // 8) * 8))
    if P <= kv:
        return P          # single full-extent chunk (always a legal block)
    return kv


def _vmem_limit_bytes():
    """Generation-aware scoped-VMEM request: ~3/4 of physical, capped at 100 MiB."""
    try:
        cap = getattr(pltpu.get_tpu_info(), "vmem_capacity_bytes", None)
    except Exception:
        cap = None
    if not cap:
        cap = 64 * 1024 * 1024
    return int(min(cap * 3 // 4, 100 * 1024 * 1024))


def simple_self_attention(x, params, past_kv=None, *, block_b=None, kv_block=None,
                          compute_dtype=jnp.bfloat16, interpret=False):
    """Pallas implementation of SimpleSelfAttention.forward.

    Args:
      x: [B, S, D] float32.
      params: 'wq','wk','wv','wo' of shape [D, D] (pre-transposed to [in, out]),
              'bq','bk','bv','bo' of shape [D].
      past_kv: optional (past_k, past_v), each [B, P, D] (passed to the kernel
               as-is, no wrapper pad/cast copy).
      compute_dtype: MXU operand dtype (bf16 default; f32 for full precision).

    Returns:
      (out, (k_cache, v_cache)): out [B, S, D], caches [B, P+S, D].
    """
    B, S, D = x.shape
    P = past_kv[0].shape[1] if past_kv is not None else 0
    has_past = P > 0
    cdt = compute_dtype

    # Weights cast once (tiny); biases stay f32 (added to f32 accumulators).
    wq = params["wq"].astype(cdt)
    wk = params["wk"].astype(cdt)
    wv = params["wv"].astype(cdt)
    wo = params["wo"].astype(cdt)
    bq = params["bq"].reshape(1, D).astype(jnp.float32)
    bk = params["bk"].reshape(1, D).astype(jnp.float32)
    bv = params["bv"].reshape(1, D).astype(jnp.float32)
    bo = params["bo"].reshape(1, D).astype(jnp.float32)

    if block_b is None:
        block_b = _pick_block_b(B, S)
    assert B % block_b == 0, "block_b must divide B"

    if has_past:
        if kv_block is None:
            kv_block = _pick_kv_block(P, block_b, D)
        assert kv_block == P or kv_block % 8 == 0, "kv_block must be a multiple of 8 (or == P)"
        nkv = pl.cdiv(P, kv_block)
    else:
        kv_block = 0
        nkv = 1

    grid = (B // block_b, nkv)   # reduction (kv) axis last, marked "arbitrary"

    # Full-extent last-dim blocks (no HBM padding, legal for any D).
    x_spec = pl.BlockSpec((block_b, S, D), lambda b, k: (b, 0, 0))
    pkv_spec = pl.BlockSpec((block_b, kv_block, D), lambda b, k: (b, k, 0))
    # NOTE: weight/bias blocks have constant index maps -> fetched once; the
    # double-buffer overhead is negligible at these sizes (skip pl.Buffered(1)).
    w_spec = pl.BlockSpec((D, D), lambda b, k: (0, 0))
    b_spec = pl.BlockSpec((1, D), lambda b, k: (0, 0))
    out_spec = pl.BlockSpec((block_b, S, D), lambda b, k: (b, 0, 0))

    in_specs = [x_spec]
    inputs = [x]
    if has_past:
        in_specs += [pkv_spec, pkv_spec]
        inputs += [past_kv[0], past_kv[1]]   # f32, cast per-tile in the kernel
    in_specs += [w_spec] * 4 + [b_spec] * 4
    inputs += [wq, wk, wv, wo, bq, bk, bv, bo]

    # TODO(synk): emit k_new/v_new in bf16 if the cache is stored in bf16 downstream.
    out_shapes = (
        jax.ShapeDtypeStruct((B, S, D), x.dtype),   # attention output
        jax.ShapeDtypeStruct((B, S, D), x.dtype),   # new K rows
        jax.ShapeDtypeStruct((B, S, D), x.dtype),   # new V rows
    )
    out_specs = (out_spec, out_spec, out_spec)

    scratch_shapes = [
        pltpu.VMEM((block_b, S, D), cdt),          # scaled q
        pltpu.VMEM((block_b, S, 1), jnp.float32),  # running max
        pltpu.VMEM((block_b, S, 1), jnp.float32),  # running sum
        pltpu.VMEM((block_b, S, D), jnp.float32),  # context accumulator
    ]

    T = P + S
    cost = pl.CostEstimate(
        flops=int(8 * B * S * D * D + 4 * B * S * T * D),
        transcendentals=int(B * S * T),
        bytes_accessed=int(4 * B * S * D            # x
                           + 2 * 4 * B * P * D       # past K/V reads
                           + 2 * 4 * D * D           # bf16 weights
                           + 4 * 4 * D               # biases
                           + 3 * 4 * B * S * D),     # out, k_new, v_new
    )

    kernel = functools.partial(_attn_kernel, has_past, 1.0 / math.sqrt(D), P, kv_block)
    out, k_new, v_new = pl.pallas_call(
        kernel,
        out_shape=out_shapes,
        grid_spec=pltpu.PrefetchScalarGridSpec(
            num_scalar_prefetch=0,
            grid=grid,
            in_specs=in_specs,
            out_specs=out_specs,
            scratch_shapes=scratch_shapes,
        ),
        compiler_params=pltpu.CompilerParams(
            dimension_semantics=("parallel", "arbitrary"),
            vmem_limit_bytes=_vmem_limit_bytes(),
        ),
        cost_estimate=cost,
        interpret=interpret,
    )(*inputs)

    # API-required full cache (see TODO at top for the in-place decode variant).
    if past_kv is not None:
        k_cache = jnp.concatenate([past_kv[0], k_new], axis=1)
        v_cache = jnp.concatenate([past_kv[1], v_new], axis=1)
    else:
        k_cache, v_cache = k_new, v_new
    return out, (k_cache, v_cache)


def _reference(x, params, past_kv=None):
    """Pure-JAX f32 reference identical to the PyTorch forward."""
    D = x.shape[-1]
    q = x @ params["wq"] + params["bq"]
    k = x @ params["wk"] + params["bk"]
    v = x @ params["wv"] + params["bv"]
    if past_kv is not None:
        k_cache = jnp.concatenate([past_kv[0], k], axis=1)
        v_cache = jnp.concatenate([past_kv[1], v], axis=1)
    else:
        k_cache, v_cache = k, v
    scores = jnp.einsum("bsd,btd->bst", q, k_cache) / math.sqrt(D)
    w = jax.nn.softmax(scores, axis=-1)
    out = jnp.einsum("bst,btd->bsd", w, v_cache) @ params["wo"] + params["bo"]
    return out, (k_cache, v_cache)


def _make_case(key, B, S, P, D, with_past):
    ks = jax.random.split(key, 11)
    scale = 1.0 / math.sqrt(D)
    params = {
        "wq": jax.random.uniform(ks[0], (D, D), jnp.float32, -scale, scale),
        "wk": jax.random.uniform(ks[1], (D, D), jnp.float32, -scale, scale),
        "wv": jax.random.uniform(ks[2], (D, D), jnp.float32, -scale, scale),
        "wo": jax.random.uniform(ks[3], (D, D), jnp.float32, -scale, scale),
        "bq": jax.random.uniform(ks[4], (D,), jnp.float32, -scale, scale),
        "bk": jax.random.uniform(ks[5], (D,), jnp.float32, -scale, scale),
        "bv": jax.random.uniform(ks[6], (D,), jnp.float32, -scale, scale),
        "bo": jax.random.uniform(ks[7], (D,), jnp.float32, -scale, scale),
    }
    x = jax.random.normal(ks[8], (B, S, D), jnp.float32)
    past = None
    if with_past:
        past = (jax.random.normal(ks[9], (B, P, D), jnp.float32),
                jax.random.normal(ks[10], (B, P, D), jnp.float32))
    return x, params, past


def _check(name, got, want, atol=3e-2, rtol=3e-2):
    ok = jnp.allclose(got, want, atol=atol, rtol=rtol)
    assert bool(ok), f"{name} mismatch: max abs err {float(jnp.max(jnp.abs(got - want)))}"


if __name__ == "__main__":
    key = jax.random.PRNGKey(0)
    k1, k2, k3, k4 = jax.random.split(key, 4)

    # Case 1: lane-dense d_model=128, with KV cache (single KV chunk).
    x, params, past = _make_case(k1, B=2, S=8, P=8, D=128, with_past=True)
    out, (kc, vc) = simple_self_attention(x, params, past_kv=past)
    jax.block_until_ready((out, kc, vc))
    r_out, (r_kc, r_vc) = _reference(x, params, past_kv=past)
    _check("out", out, r_out)
    _check("k_cache", kc, r_kc)
    _check("v_cache", vc, r_vc)

    # Case 2: no cache (past_kv=None).
    x2, params2, _ = _make_case(k2, B=2, S=8, P=0, D=128, with_past=False)
    out2, (kc2, vc2) = simple_self_attention(x2, params2, past_kv=None)
    jax.block_until_ready((out2, kc2, vc2))
    r_out2, (r_kc2, r_vc2) = _reference(x2, params2, past_kv=None)
    _check("out (no past)", out2, r_out2)
    _check("k_cache (no past)", kc2, r_kc2)
    _check("v_cache (no past)", vc2, r_vc2)

    # Case 3: d_model=32 (not a multiple of 128) — full-extent blocks, no padding.
    x3, params3, past3 = _make_case(k3, B=2, S=8, P=8, D=32, with_past=True)
    out3, (kc3, vc3) = simple_self_attention(x3, params3, past_kv=past3)
    jax.block_until_ready((out3, kc3, vc3))
    r_out3, (r_kc3, r_vc3) = _reference(x3, params3, past_kv=past3)
    _check("out (D=32)", out3, r_out3)
    _check("k_cache (D=32)", kc3, r_kc3)
    _check("v_cache (D=32)", vc3, r_vc3)

    # Case 4: streamed KV chunks with a ragged final chunk (P=20, kv_block=8).
    x4, params4, past4 = _make_case(k4, B=2, S=8, P=20, D=128, with_past=True)
    out4, (kc4, vc4) = simple_self_attention(x4, params4, past_kv=past4, kv_block=8)
    jax.block_until_ready((out4, kc4, vc4))
    r_out4, (r_kc4, r_vc4) = _reference(x4, params4, past_kv=past4)
    _check("out (streamed KV)", out4, r_out4)
    _check("k_cache (streamed KV)", kc4, r_kc4)
    _check("v_cache (streamed KV)", vc4, r_vc4)

    print("KERNEL_OK")
</pallas_src>

<mosaic_0001>
module attributes {stable_mosaic.version = 11 : i64} {
  func.func @_attn_kernel(%arg0: i32, %arg1: i32, %arg2: memref<1x8x128xf32, #tpu.memory_space<vmem>>, %arg3: memref<1x8x128xf32, #tpu.memory_space<vmem>>, %arg4: memref<1x8x128xf32, #tpu.memory_space<vmem>>, %arg5: memref<128x128xbf16, #tpu.memory_space<vmem>>, %arg6: memref<128x128xbf16, #tpu.memory_space<vmem>>, %arg7: memref<128x128xbf16, #tpu.memory_space<vmem>>, %arg8: memref<128x128xbf16, #tpu.memory_space<vmem>>, %arg9: memref<1x128xf32, #tpu.memory_space<vmem>>, %arg10: memref<1x128xf32, #tpu.memory_space<vmem>>, %arg11: memref<1x128xf32, #tpu.memory_space<vmem>>, %arg12: memref<1x128xf32, #tpu.memory_space<vmem>>, %arg13: memref<1x8x128xf32, #tpu.memory_space<vmem>>, %arg14: memref<1x8x128xf32, #tpu.memory_space<vmem>>, %arg15: memref<1x8x128xf32, #tpu.memory_space<vmem>>, %arg16: memref<1x8x128xbf16, #tpu.memory_space<vmem>>, %arg17: memref<1x8x1xf32, #tpu.memory_space<vmem>>, %arg18: memref<1x8x1xf32, #tpu.memory_space<vmem>>, %arg19: memref<1x8x128xf32, #tpu.memory_space<vmem>>) attributes {dimension_semantics = [#tpu.dimension_semantics<parallel>, #tpu.dimension_semantics<arbitrary>], iteration_bounds = array<i64: 2, 1>, scalar_prefetch = 0 : i64, scratch_operands = 4 : i64, tpu.core_type = #tpu.core_type<tc>, window_params = [{transform_indices = @transform_0, window_bounds = array<i64: 1, 8, 128>}, {transform_indices = @transform_1, window_bounds = array<i64: 1, 8, 128>}, {transform_indices = @transform_2, window_bounds = array<i64: 1, 8, 128>}, {pipeline_mode = #tpu.pipeline_mode<synchronous>, transform_indices = @transform_3, window_bounds = array<i64: 128, 128>}, {pipeline_mode = #tpu.pipeline_mode<synchronous>, transform_indices = @transform_4, window_bounds = array<i64: 128, 128>}, {pipeline_mode = #tpu.pipeline_mode<synchronous>, transform_indices = @transform_5, window_bounds = array<i64: 128, 128>}, {pipeline_mode = #tpu.pipeline_mode<synchronous>, transform_indices = @transform_6, window_bounds = array<i64: 128, 128>}, {pipeline_mode = #tpu.pipeline_mode<synchronous>, transform_indices = @transform_7, window_bounds = array<i64: 1, 128>}, {pipeline_mode = #tpu.pipeline_mode<synchronous>, transform_indices = @transform_8, window_bounds = array<i64: 1, 128>}, {pipeline_mode = #tpu.pipeline_mode<synchronous>, transform_indices = @transform_9, window_bounds = array<i64: 1, 128>}, {pipeline_mode = #tpu.pipeline_mode<synchronous>, transform_indices = @transform_10, window_bounds = array<i64: 1, 128>}, {transform_indices = @transform_11, window_bounds = array<i64: 1, 8, 128>}, {transform_indices = @transform_12, window_bounds = array<i64: 1, 8, 128>}, {transform_indices = @transform_13, window_bounds = array<i64: 1, 8, 128>}]} {
    %c0_i32 = arith.constant 0 : i32
    %0 = arith.cmpi eq, %arg1, %c0_i32 : i32
    %1 = arith.extui %0 : i1 to i32
    %c0_i32_0 = arith.constant 0 : i32
    %2 = arith.cmpi ne, %1, %c0_i32_0 : i32
    scf.if %2 {
      %c0_32 = arith.constant 0 : index
      %c0_33 = arith.constant 0 : index
      %c0_34 = arith.constant 0 : index
      %35 = vector.load %arg2[%c0_32, %c0_33, %c0_34] : memref<1x8x128xf32, #tpu.memory_space<vmem>>, vector<1x8x128xf32>
      %36 = arith.truncf %35 : vector<1x8x128xf32> to vector<1x8x128xbf16>
      %37 = vector.shape_cast %36 : vector<1x8x128xbf16> to vector<8x128xbf16>
      %c0_35 = arith.constant 0 : index
      %c0_36 = arith.constant 0 : index
      %38 = vector.load %arg5[%c0_35, %c0_36] : memref<128x128xbf16, #tpu.memory_space<vmem>>, vector<128x128xbf16>
      %cst_37 = arith.constant dense<0.000000e+00> : vector<8x128xf32>
      %39 = tpu.matmul %37, %38, %cst_37 {dimension_numbers = #tpu.dot_dimension_numbers<[1], [0], [0], [1], [0, 0, 1, 1], [], []>} : vector<8x128xbf16>, vector<128x128xbf16>, vector<8x128xf32> -> vector<8x128xf32>
      %c0_38 = arith.constant 0 : index
      %c0_39 = arith.constant 0 : index
      %40 = vector.load %arg9[%c0_38, %c0_39] : memref<1x128xf32, #tpu.memory_space<vmem>>, vector<1x128xf32>
      %41 = vector.broadcast %40 : vector<1x128xf32> to vector<8x128xf32>
      %42 = arith.addf %39, %41 : vector<8x128xf32>
      %c0_40 = arith.constant 0 : index
      %c0_41 = arith.constant 0 : index
      %43 = vector.load %arg6[%c0_40, %c0_41] : memref<128x128xbf16, #tpu.memory_space<vmem>>, vector<128x128xbf16>
      %cst_42 = arith.constant dense<0.000000e+00> : vector<8x128xf32>
      %44 = tpu.matmul %37, %43, %cst_42 {dimension_numbers = #tpu.dot_dimension_numbers<[1], [0], [0], [1], [0, 0, 1, 1], [], []>} : vector<8x128xbf16>, vector<128x128xbf16>, vector<8x128xf32> -> vector<8x128xf32>
      %c0_43 = arith.constant 0 : index
      %c0_44 = arith.constant 0 : index
      %45 = vector.load %arg10[%c0_43, %c0_44] : memref<1x128xf32, #tpu.memory_space<vmem>>, vector<1x128xf32>
      %46 = vector.broadcast %45 : vector<1x128xf32> to vector<8x128xf32>
      %47 = arith.addf %44, %46 : vector<8x128xf32>
      %c0_45 = arith.constant 0 : index
      %c0_46 = arith.constant 0 : index
      %48 = vector.load %arg7[%c0_45, %c0_46] : memref<128x128xbf16, #tpu.memory_space<vmem>>, vector<128x128xbf16>
      %cst_47 = arith.constant dense<0.000000e+00> : vector<8x128xf32>
      %49 = tpu.matmul %37, %48, %cst_47 {dimension_numbers = #tpu.dot_dimension_numbers<[1], [0], [0], [1], [0, 0, 1, 1], [], []>} : vector<8x128xbf16>, vector<128x128xbf16>, vector<8x128xf32> -> vector<8x128xf32>
      %c0_48 = arith.constant 0 : index
      %c0_49 = arith.constant 0 : index
      %50 = vector.load %arg11[%c0_48, %c0_49] : memref<1x128xf32, #tpu.memory_space<vmem>>, vector<1x128xf32>
      %51 = vector.broadcast %50 : vector<1x128xf32> to vector<8x128xf32>
      %52 = arith.addf %49, %51 : vector<8x128xf32>
      %53 = vector.shape_cast %47 : vector<8x128xf32> to vector<1x8x128xf32>
      %c0_50 = arith.constant 0 : index
      %c0_51 = arith.constant 0 : index
      %c0_52 = arith.constant 0 : index
      %54 = vector.load %arg14[%c0_50, %c0_51, %c0_52] : memref<1x8x128xf32, #tpu.memory_space<vmem>>, vector<1x8x128xf32>
      tpu.vector_store %arg14[%c0_50, %c0_51, %c0_52], %53 {strides = array<i32>} : memref<1x8x128xf32, #tpu.memory_space<vmem>>, vector<1x8x128xf32>,
      %55 = vector.shape_cast %52 : vector<8x128xf32> to vector<1x8x128xf32>
      %c0_53 = arith.constant 0 : index
      %c0_54 = arith.constant 0 : index
      %c0_55 = arith.constant 0 : index
      %56 = vector.load %arg15[%c0_53, %c0_54, %c0_55] : memref<1x8x128xf32, #tpu.memory_space<vmem>>, vector<1x8x128xf32>
      tpu.vector_store %arg15[%c0_53, %c0_54, %c0_55], %55 {strides = array<i32>} : memref<1x8x128xf32, #tpu.memory_space<vmem>>, vector<1x8x128xf32>,
      %cst_56 = arith.constant 0.0883883461 : f32
      %57 = vector.broadcast %cst_56 : f32 to vector<8x128xf32>
      %58 = arith.mulf %42, %57 : vector<8x128xf32>
      %59 = vector.shape_cast %58 : vector<8x128xf32> to vector<1x8x128xf32>
      %60 = arith.truncf %59 : vector<1x8x128xf32> to vector<1x8x128xbf16>
      %61 = vector.shape_cast %47 : vector<8x128xf32> to vector<1x8x128xf32>
      %62 = arith.truncf %61 : vector<1x8x128xf32> to vector<1x8x128xbf16>
      %63 = vector.shape_cast %52 : vector<8x128xf32> to vector<1x8x128xf32>
      %64 = arith.truncf %63 : vector<1x8x128xf32> to vector<1x8x128xbf16>
      %c0_57 = arith.constant 0 : index
      %c0_58 = arith.constant 0 : index
      %c0_59 = arith.constant 0 : index
      %65 = vector.load %arg16[%c0_57, %c0_58, %c0_59] : memref<1x8x128xbf16, #tpu.memory_space<vmem>>, vector<1x8x128xbf16>
      tpu.vector_store %arg16[%c0_57, %c0_58, %c0_59], %60 {strides = array<i32>} : memref<1x8x128xbf16, #tpu.memory_space<vmem>>, vector<1x8x128xbf16>,
      "tpu.trace_start"() <{level = 10 : i32, message = "bqd,bkd->bqk"}> : () -> ()
      %cst_60 = arith.constant dense<0.000000e+00> : vector<1x8x8xf32>
      %66 = tpu.matmul %60, %62, %cst_60 {dimension_numbers = #tpu.dot_dimension_numbers<[2], [2], [1], [1], [0, 0, 0, 1, 1, 1], [0], [0]>} : vector<1x8x128xbf16>, vector<1x8x128xbf16>, vector<1x8x8xf32> -> vector<1x8x8xf32>
      "tpu.trace_stop"() : () -> ()
      %cst_61 = arith.constant dense<0xFF800000> : vector<1x8xf32>
      %67 = vector.multi_reduction <maximumf>, %66, %cst_61 [2] : vector<1x8x8xf32> to vector<1x8xf32>
      %68 = vector.shape_cast %67 : vector<1x8xf32> to vector<1x8x1xf32>
      %69 = vector.broadcast %68 : vector<1x8x1xf32> to vector<1x8x8xf32>
      %70 = arith.subf %66, %69 : vector<1x8x8xf32>
      %71 = math.exp %70 : vector<1x8x8xf32>
      %c0_62 = arith.constant 0 : index
      %c0_63 = arith.constant 0 : index
      %c0_64 = arith.constant 0 : index
      %72 = vector.load %arg17[%c0_62, %c0_63, %c0_64] : memref<1x8x1xf32, #tpu.memory_space<vmem>>, vector<1x8x1xf32>
      tpu.vector_store %arg17[%c0_62, %c0_63, %c0_64], %68 {strides = array<i32>} : memref<1x8x1xf32, #tpu.memory_space<vmem>>, vector<1x8x1xf32>,
      %cst_65 = arith.constant dense<0.000000e+00> : vector<1x8xf32>
      %73 = vector.multi_reduction <add>, %71, %cst_65 [2] : vector<1x8x8xf32> to vector<1x8xf32>
      %74 = vector.shape_cast %73 : vector<1x8xf32> to vector<1x8x1xf32>
      %c0_66 = arith.constant 0 : index
      %c0_67 = arith.constant 0 : index
      %c0_68 = arith.constant 0 : index
      %75 = vector.load %arg18[%c0_66, %c0_67, %c0_68] : memref<1x8x1xf32, #tpu.memory_space<vmem>>, vector<1x8x1xf32>
      tpu.vector_store %arg18[%c0_66, %c0_67, %c0_68], %74 {strides = array<i32>} : memref<1x8x1xf32, #tpu.memory_space<vmem>>, vector<1x8x1xf32>,
      %76 = arith.truncf %71 : vector<1x8x8xf32> to vector<1x8x8xbf16>
      "tpu.trace_start"() <{level = 10 : i32, message = "bqk,bkd->bqd"}> : () -> ()
      %cst_69 = arith.constant dense<0.000000e+00> : vector<1x8x128xf32>
      %77 = tpu.matmul %76, %64, %cst_69 {dimension_numbers = #tpu.dot_dimension_numbers<[2], [1], [1], [2], [0, 0, 0, 1, 1, 2], [0], [0]>} : vector<1x8x8xbf16>, vector<1x8x128xbf16>, vector<1x8x128xf32> -> vector<1x8x128xf32>
      "tpu.trace_stop"() : () -> ()
      %c0_70 = arith.constant 0 : index
      %c0_71 = arith.constant 0 : index
      %c0_72 = arith.constant 0 : index
      %78 = vector.load %arg19[%c0_70, %c0_71, %c0_72] : memref<1x8x128xf32, #tpu.memory_space<vmem>>, vector<1x8x128xf32>
      tpu.vector_store %arg19[%c0_70, %c0_71, %c0_72], %77 {strides = array<i32>} : memref<1x8x128xf32, #tpu.memory_space<vmem>>, vector<1x8x128xf32>,
    } else {
    }
    %c0 = arith.constant 0 : index
    %c0_1 = arith.constant 0 : index
    %c0_2 = arith.constant 0 : index
    %3 = vector.load %arg16[%c0, %c0_1, %c0_2] : memref<1x8x128xbf16, #tpu.memory_space<vmem>>, vector<1x8x128xbf16>
    %c0_3 = arith.constant 0 : index
    %c0_4 = arith.constant 0 : index
    %c0_5 = arith.constant 0 : index
    %4 = vector.load %arg3[%c0_3, %c0_4, %c0_5] : memref<1x8x128xf32, #tpu.memory_space<vmem>>, vector<1x8x128xf32>
    %5 = arith.truncf %4 : vector<1x8x128xf32> to vector<1x8x128xbf16>
    %c0_6 = arith.constant 0 : index
    %c0_7 = arith.constant 0 : index
    %c0_8 = arith.constant 0 : index
    %6 = vector.load %arg4[%c0_6, %c0_7, %c0_8] : memref<1x8x128xf32, #tpu.memory_space<vmem>>, vector<1x8x128xf32>
    %7 = arith.truncf %6 : vector<1x8x128xf32> to vector<1x8x128xbf16>
    "tpu.trace_start"() <{level = 10 : i32, message = "bqd,bkd->bqk"}> : () -> ()
    %cst = arith.constant dense<0.000000e+00> : vector<1x8x8xf32>
    %8 = tpu.matmul %3, %5, %cst {dimension_numbers = #tpu.dot_dimension_numbers<[2], [2], [1], [1], [0, 0, 0, 1, 1, 1], [0], [0]>} : vector<1x8x128xbf16>, vector<1x8x128xbf16>, vector<1x8x8xf32> -> vector<1x8x8xf32>
    "tpu.trace_stop"() : () -> ()
    %c0_9 = arith.constant 0 : index
    %c0_10 = arith.constant 0 : index
    %c0_11 = arith.constant 0 : index
    %9 = vector.load %arg17[%c0_9, %c0_10, %c0_11] : memref<1x8x1xf32, #tpu.memory_space<vmem>>, vector<1x8x1xf32>
    %cst_12 = arith.constant dense<0xFF800000> : vector<1x8xf32>
    %10 = vector.multi_reduction <maximumf>, %8, %cst_12 [2] : vector<1x8x8xf32> to vector<1x8xf32>
    %11 = vector.shape_cast %10 : vector<1x8xf32> to vector<1x8x1xf32>
    %12 = arith.maximumf %9, %11 : vector<1x8x1xf32>
    %13 = arith.subf %9, %12 : vector<1x8x1xf32>
    %14 = math.exp %13 : vector<1x8x1xf32>
    %15 = vector.broadcast %12 : vector<1x8x1xf32> to vector<1x8x8xf32>
    %16 = arith.subf %8, %15 : vector<1x8x8xf32>
    %17 = math.exp %16 : vector<1x8x8xf32>
    %c0_13 = arith.constant 0 : index
    %c0_14 = arith.constant 0 : index
    %c0_15 = arith.constant 0 : index
    %18 = vector.load %arg18[%c0_13, %c0_14, %c0_15] : memref<1x8x1xf32, #tpu.memory_space<vmem>>, vector<1x8x1xf32>
    %19 = arith.mulf %14, %18 : vector<1x8x1xf32>
    %cst_16 = arith.constant dense<0.000000e+00> : vector<1x8xf32>
    %20 = vector.multi_reduction <add>, %17, %cst_16 [2] : vector<1x8x8xf32> to vector<1x8xf32>
    %21 = vector.shape_cast %20 : vector<1x8xf32> to vector<1x8x1xf32>
    %22 = arith.addf %19, %21 : vector<1x8x1xf32>
    %c0_17 = arith.constant 0 : index
    %c0_18 = arith.constant 0 : index
    %c0_19 = arith.constant 0 : index
    %23 = vector.load %arg18[%c0_17, %c0_18, %c0_19] : memref<1x8x1xf32, #tpu.memory_space<vmem>>, vector<1x8x1xf32>
    tpu.vector_store %arg18[%c0_17, %c0_18, %c0_19], %22 {strides = array<i32>} : memref<1x8x1xf32, #tpu.memory_space<vmem>>, vector<1x8x1xf32>,
    %c0_20 = arith.constant 0 : index
    %c0_21 = arith.constant 0 : index
    %c0_22 = arith.constant 0 : index
    %24 = vector.load %arg19[%c0_20, %c0_21, %c0_22] : memref<1x8x128xf32, #tpu.memory_space<vmem>>, vector<1x8x128xf32>
    %25 = vector.broadcast %14 : vector<1x8x1xf32> to vector<1x8x128xf32>
    %26 = arith.mulf %25, %24 : vector<1x8x128xf32>
    %27 = arith.truncf %17 : vector<1x8x8xf32> to vector<1x8x8xbf16>
    "tpu.trace_start"() <{level = 10 : i32, message = "bqk,bkd->bqd"}> : () -> ()
    %cst_23 = arith.constant dense<0.000000e+00> : vector<1x8x128xf32>
    %28 = tpu.matmul %27, %7, %cst_23 {dimension_numbers = #tpu.dot_dimension_numbers<[2], [1], [1], [2], [0, 0, 0, 1, 1, 2], [0], [0]>} : vector<1x8x8xbf16>, vector<1x8x128xbf16>, vector<1x8x128xf32> -> vector<1x8x128xf32>
    "tpu.trace_stop"() : () -> ()
    %29 = arith.addf %26, %28 : vector<1x8x128xf32>
    %c0_24 = arith.constant 0 : index
    %c0_25 = arith.constant 0 : index
    %c0_26 = arith.constant 0 : index
    %30 = vector.load %arg19[%c0_24, %c0_25, %c0_26] : memref<1x8x128xf32, #tpu.memory_space<vmem>>, vector<1x8x128xf32>
    tpu.vector_store %arg19[%c0_24, %c0_25, %c0_26], %29 {strides = array<i32>} : memref<1x8x128xf32, #tpu.memory_space<vmem>>, vector<1x8x128xf32>,
    %c0_27 = arith.constant 0 : index
    %c0_28 = arith.constant 0 : index
    %c0_29 = arith.constant 0 : index
    %31 = vector.load %arg17[%c0_27, %c0_28, %c0_29] : memref<1x8x1xf32, #tpu.memory_space<vmem>>, vector<1x8x1xf32>
    tpu.vector_store %arg17[%c0_27, %c0_28, %c0_29], %12 {strides = array<i32>} : memref<1x8x1xf32, #tpu.memory_space<vmem>>, vector<1x8x1xf32>,
    %c0_i32_30 = arith.constant 0 : i32
    %32 = arith.cmpi eq, %arg1, %c0_i32_30 : i32
    %33 = arith.extui %32 : i1 to i32
    %c0_i32_31 = arith.constant 0 : i32
    %34 = arith.cmpi ne, %33, %c0_i32_31 : i32
    scf.if %34 {
      %c0_32 = arith.constant 0 : index
      %c0_33 = arith.constant 0 : index
      %c0_34 = arith.constant 0 : index
      %35 = vector.load %arg19[%c0_32, %c0_33, %c0_34] : memref<1x8x128xf32, #tpu.memory_space<vmem>>, vector<1x8x128xf32>
      %c0_35 = arith.constant 0 : index
      %c0_36 = arith.constant 0 : index
      %c0_37 = arith.constant 0 : index
      %36 = vector.load %arg18[%c0_35, %c0_36, %c0_37] : memref<1x8x1xf32, #tpu.memory_space<vmem>>, vector<1x8x1xf32>
      %37 = tpu.reciprocal %36 {approx = true} : vector<1x8x1xf32> -> vector<1x8x1xf32>
      %38 = vector.broadcast %37 : vector<1x8x1xf32> to vector<1x8x128xf32>
      %39 = arith.mulf %35, %38 : vector<1x8x128xf32>
      %40 = arith.truncf %39 : vector<1x8x128xf32> to vector<1x8x128xbf16>
      %41 = vector.shape_cast %40 : vector<1x8x128xbf16> to vector<8x128xbf16>
      %c0_38 = arith.constant 0 : index
      %c0_39 = arith.constant 0 : index
      %42 = vector.load %arg8[%c0_38, %c0_39] : memref<128x128xbf16, #tpu.memory_space<vmem>>, vector<128x128xbf16>
      %cst_40 = arith.constant dense<0.000000e+00> : vector<8x128xf32>
      %43 = tpu.matmul %41, %42, %cst_40 {dimension_numbers = #tpu.dot_dimension_numbers<[1], [0], [0], [1], [0, 0, 1, 1], [], []>} : vector<8x128xbf16>, vector<128x128xbf16>, vector<8x128xf32> -> vector<8x128xf32>
      %c0_41 = arith.constant 0 : index
      %c0_42 = arith.constant 0 : index
      %44 = vector.load %arg12[%c0_41, %c0_42] : memref<1x128xf32, #tpu.memory_space<vmem>>, vector<1x128xf32>
      %45 = vector.broadcast %44 : vector<1x128xf32> to vector<8x128xf32>
      %46 = arith.addf %43, %45 : vector<8x128xf32>
      %47 = vector.shape_cast %46 : vector<8x128xf32> to vector<1x8x128xf32>
      %c0_43 = arith.constant 0 : index
      %c0_44 = arith.constant 0 : index
      %c0_45 = arith.constant 0 : index
      %48 = vector.load %arg13[%c0_43, %c0_44, %c0_45] : memref<1x8x128xf32, #tpu.memory_space<vmem>>, vector<1x8x128xf32>
      tpu.vector_store %arg13[%c0_43, %c0_44, %c0_45], %47 {strides = array<i32>} : memref<1x8x128xf32, #tpu.memory_space<vmem>>, vector<1x8x128xf32>,
    } else {
    }
    return
  }
  func.func @transform_0(%arg0: i32, %arg1: i32) -> (i32, i32, i32) {
    %c0_i32 = arith.constant 0 : i32
    %c0_i32_0 = arith.constant 0 : i32
    %c0_i32_1 = arith.constant 0 : i32
    return %arg0, %c0_i32, %c0_i32_0 : i32, i32, i32
  }
  func.func @transform_1(%arg0: i32, %arg1: i32) -> (i32, i32, i32) {
    %c0_i32 = arith.constant 0 : i32
    %c0_i32_0 = arith.constant 0 : i32
    return %arg0, %arg1, %c0_i32 : i32, i32, i32
  }
  func.func @transform_2(%arg0: i32, %arg1: i32) -> (i32, i32, i32) {
    %c0_i32 = arith.constant 0 : i32
    %c0_i32_0 = arith.constant 0 : i32
    return %arg0, %arg1, %c0_i32 : i32, i32, i32
  }
  func.func @transform_3(%arg0: i32, %arg1: i32) -> (i32, i32) {
    %c0_i32 = arith.constant 0 : i32
    %c0_i32_0 = arith.constant 0 : i32
    %c0_i32_1 = arith.constant 0 : i32
    return %c0_i32, %c0_i32_0 : i32, i32
  }
  func.func @transform_4(%arg0: i32, %arg1: i32) -> (i32, i32) {
    %c0_i32 = arith.constant 0 : i32
    %c0_i32_0 = arith.constant 0 : i32
    %c0_i32_1 = arith.constant 0 : i32
    return %c0_i32, %c0_i32_0 : i32, i32
  }
  func.func @transform_5(%arg0: i32, %arg1: i32) -> (i32, i32) {
    %c0_i32 = arith.constant 0 : i32
    %c0_i32_0 = arith.constant 0 : i32
    %c0_i32_1 = arith.constant 0 : i32
    return %c0_i32, %c0_i32_0 : i32, i32
  }
  func.func @transform_6(%arg0: i32, %arg1: i32) -> (i32, i32) {
    %c0_i32 = arith.constant 0 : i32
    %c0_i32_0 = arith.constant 0 : i32
    %c0_i32_1 = arith.constant 0 : i32
    return %c0_i32, %c0_i32_0 : i32, i32
  }
  func.func @transform_7(%arg0: i32, %arg1: i32) -> (i32, i32) {
    %c0_i32 = arith.constant 0 : i32
    %c0_i32_0 = arith.constant 0 : i32
    %c0_i32_1 = arith.constant 0 : i32
    return %c0_i32, %c0_i32_0 : i32, i32
  }
  func.func @transform_8(%arg0: i32, %arg1: i32) -> (i32, i32) {
    %c0_i32 = arith.constant 0 : i32
    %c0_i32_0 = arith.constant 0 : i32
    %c0_i32_1 = arith.constant 0 : i32
    return %c0_i32, %c0_i32_0 : i32, i32
  }
  func.func @transform_9(%arg0: i32, %arg1: i32) -> (i32, i32) {
    %c0_i32 = arith.constant 0 : i32
    %c0_i32_0 = arith.constant 0 : i32
    %c0_i32_1 = arith.constant 0 : i32
    return %c0_i32, %c0_i32_0 : i32, i32
  }
  func.func @transform_10(%arg0: i32, %arg1: i32) -> (i32, i32) {
    %c0_i32 = arith.constant 0 : i32
    %c0_i32_0 = arith.constant 0 : i32
    %c0_i32_1 = arith.constant 0 : i32
    return %c0_i32, %c0_i32_0 : i32, i32
  }
  func.func @transform_11(%arg0: i32, %arg1: i32) -> (i32, i32, i32) {
    %c0_i32 = arith.constant 0 : i32
    %c0_i32_0 = arith.constant 0 : i32
    %c0_i32_1 = arith.constant 0 : i32
    return %arg0, %c0_i32, %c0_i32_0 : i32, i32, i32
  }
  func.func @transform_12(%arg0: i32, %arg1: i32) -> (i32, i32, i32) {
    %c0_i32 = arith.constant 0 : i32
    %c0_i32_0 = arith.constant 0 : i32
    %c0_i32_1 = arith.constant 0 : i32
    return %arg0, %c0_i32, %c0_i32_0 : i32, i32, i32
  }
  func.func @transform_13(%arg0: i32, %arg1: i32) -> (i32, i32, i32) {
    %c0_i32 = arith.constant 0 : i32
    %c0_i32_0 = arith.constant 0 : i32
    %c0_i32_1 = arith.constant 0 : i32
    return %arg0, %c0_i32, %c0_i32_0 : i32, i32, i32
  }
}

</mosaic_0001>

<bundles_post_ra>
// kernel: tpu_custom_call.1
= control target key start
LH: loop header
LB: loop body
LE: loop exit
PB: predicated region body
PF: predicated region fallthrough
CT: control target
= control target key end

     0   :  { %s2819_s0 = inlined_call_operand.hbm [shape: f32[2,8,128], index: 0, kind: input, shape index: {}]   ;;  %s2820_s1 = inlined_call_operand.hbm [shape: f32[2,8,128], index: 1, kind: input, shape index: {}]   ;;  %s2821_s2 = inlined_call_operand.hbm [shape: f32[2,8,128], index: 2, kind: input, shape index: {}]   ;;  %s2822_s3 = inlined_call_operand.hbm [shape: bf16[128,128], index: 3, kind: input, shape index: {}]   ;;  %s2823_s4 = inlined_call_operand.hbm [shape: bf16[128,128], index: 4, kind: input, shape index: {}]   ;;  %s2824_s5 = inlined_call_operand.hbm [shape: bf16[128,128], index: 5, kind: input, shape index: {}]   ;;  %s2825_s6 = inlined_call_operand.hbm [shape: bf16[128,128], index: 6, kind: input, shape index: {}]   ;;  %s2826_s7 = inlined_call_operand.vmem [shape: f32[1,128], index: 7, kind: input, shape index: {}]   ;;  %s2827_s8 = inlined_call_operand.vmem [shape: f32[1,128], index: 8, kind: input, shape index: {}]   ;;  %s2828_s9 = inlined_call_operand.vmem [shape: f32[1,128], index: 9, kind: input, shape index: {}]   ;;  %s2829_s10 = inlined_call_operand.vmem [shape: f32[1,128], index: 10, kind: input, shape index: {}]   ;;  %s2830_s11 = inlined_call_operand.hbm [shape: f32[2,8,128], index: 11, kind: output, shape index: {0}]   ;;  %s2831_s12 = inlined_call_operand.hbm [shape: f32[2,8,128], index: 12, kind: output, shape index: {1}]   ;;  %s2832_s13 = inlined_call_operand.hbm [shape: f32[2,8,128], index: 13, kind: output, shape index: {2}]  }
   0x1   :  { %2854 = sst [smem:[#allocation35_spill]] %s2820_s1 }
   0x2   :  { %2855 = sst [smem:[#allocation36_spill]] %s2822_s3 }
   0x3   :  { %2856 = sst [smem:[#allocation37_spill]] %s2823_s4 }
   0x4   :  { %2857 = sst [smem:[#allocation38_spill]] %s2824_s5 }
   0x5   :  { %2858 = sst [smem:[#allocation39_spill]] %s2829_s10 }
   0x6   :  { %2859 = sst [smem:[#allocation40_spill]] %s2830_s11 }
   0x7   :  { %2860 = sst [smem:[#allocation41_spill]] %s2831_s12 }
   0x8   :  { %2861 = sst [smem:[#allocation42_spill]] %s2832_s13 }
   0x9   :  { %19 = vsyncpa [#allocation7], 0 }
   0xa   :  { %21 = vsyncpa [#allocation7 + $0x1], 0 }
   0xb   :  { %22 = vsyncpa [#allocation10], 0 }
   0xc   :  { %24 = vsyncpa [#allocation10 + $0x1], 0 }
   0xd   :  { %25 = vsyncpa [#allocation13], 0 }
   0xe   :  { %26 = vsyncpa [#allocation16], 0 }
   0xf   :  { %27 = vsyncpa [#allocation8], 0 }
  0x10   :  { %29 = vsyncpa [#allocation8 + $0x1], 0 }
  0x11   :  { %30 = vsyncpa [#allocation20], 0 }
  0x12   :  { %32 = vsyncpa [#allocation20 + $0x1], 0  ;;  %s2407_s25 = smov 0   ;;  %s2409_s26 = smov 0  }
  0x13   :  { %s2411_s27 = smov 0   ;;  %s2413_s28 = smov 0  }
  0x14   :  { %s2415_s29 = smov 0   ;;  %s2417_s30 = smov 0  }
  0x15 LB: > { %2862 = sst [smem:[#allocation28_spill]] %s2300_s25  ;;  %s2438_s14 = sadd.s32 4294967295, %s2320_s30   ;;  %s2320_s30 = sphi %s2417_s30, %s38_s30   ;;  %s2316_s29 = sphi %s2415_s29, %s2905_s29   ;;  %s2312_s28 = sphi %s2413_s28, %s2904_s28   ;;  %s2308_s27 = sphi %s2411_s27, %s2908_s27   ;;  %s2304_s26 = sphi %s2409_s26, %s2907_s26   ;;  %s2300_s25 = sphi %s2407_s25, %s2906_s25  }
  0x16   : > { %2863 = sst [smem:[#allocation29_spill]] %s2316_s29  ;;  %p1597_p0 = scmp.ge.s32.totalorder %s2320_s30, 1 }
  0x17   : > { %2864 = sst [smem:[#allocation30_spill]] %s2320_s30  ;;  %p2847_p1 = scmp.eq.s32.totalorder %s2438_s14, 0 }
  0x18   : > { %p383_p2 = scmp.lt.s32.totalorder %s2320_s30, 3  ;;  %s2322_s16 = smov [#allocation12]  }
  0x19   : > { %s395_s17 = sshll.u32 %s2322_s16, 4  ;;  %s2323_s19 = smov [#allocation15]   ;;  %s396_s17 = int_to_ptr.vmem [resolvable:$true] %s395_s17 }
  0x1a   : > { %p2443_p3 = pnand %p1597_p0, %p383_p2  ;;  %s421_s20 = sshll.u32 %s2323_s19, 4  ;;  %s422_s20 = int_to_ptr.vmem [resolvable:$true] %s421_s20 }
  0x1b   : > { %s1995_s21 = scalar_lea.vmem %s396_s17, 1024  ;;  %p2003_p11 = scmp.lt.s32.totalorder %s396_s17, %s396_s17 }
  0x1c   : > { %p1842_p4 = pneg %p2443_p3  ;;  %p1996_p8 = scmp.ne.s32.totalorder %s396_s17, %s1995_s21 }
  0x1d   : > { %p2004_p12 = scmp.lt.s32.totalorder %s1995_s21, %s1995_s21 }
  0x1e   : > { %p2452_p6 = pnand %p1842_p4, %p2847_p1 }
  0x1f   : > { %p2005_p13 = por %p2004_p12, %p2003_p11 }
  0x20   : > { %p2848_p7 = pneg %p2452_p6 }
  0x22   : > { %p1998_p9 = pnand %p1996_p8, %p2848_p7 }
  0x24   : > { %p1999_p10 = pneg %p1998_p9 }
  0x26   : > { %p2006_p0 = pnand %p2005_p13, %p1999_p10 }
  0x28   : > { %2009 = shalt.err (!%p2006_p0)
}
  0x29   : > { %s2834_s22 = smov 64   ;;  %s2836_s23 = smov 4  }
  0x2a   : > { %s2867_s3 = sld [smem:[#allocation36_spill]]  ;;  %s2021_s19 = scalar_lea.vmem %s422_s20, 1024 }
  0x2b   : > { %p2022_p2 = scmp.ne.s32.totalorder %s422_s20, %s2021_s19  ;;  %p2029_p9 = scmp.lt.s32.totalorder %s422_s20, %s422_s20 }
  0x2c   : > { %p2030_p10 = scmp.lt.s32.totalorder %s2021_s19, %s2021_s19 }
  0x2d   : > { %p2024_p4 = pnand %p2022_p2, %p2848_p7 }
  0x2e   : > { %p2031_p11 = por %p2030_p10, %p2029_p9 }
  0x2f   : > { %p2025_p8 = pneg %p2024_p4 }
  0x30   : > { %1845 = dma.hbm_to_vmem [thread:$0]  (!%p2452_p6), %s2867_s3, 1024, %s396_s17, [#allocation13], %s2834_s22, %s2834_s22, %s2836_s23  }
  0x31   : > { %p2032_p12 = pnand %p2031_p11, %p2025_p8 }
  0x33   : > { %2035 = shalt.err (!%p2032_p12)
}
  0x34   : > { %s2868_s5 = sld [smem:[#allocation38_spill]]  ;;  %s2839_s17 = sadd.s32 4294967294, %s2320_s30  }
  0x35   : > { %s50_s24 = sadd.s32 1, %s2316_s29  ;;  %s57_s11 = sadd.s32 1, %s2308_s27 }
  0x36   : > { %p52_p13 = scmp.ge.s32.totalorder %s50_s24, 2  ;;  %p64_p0 = scmp.ne.s32.totalorder %s2308_s27, %s2304_s26 }
  0x37   : > { %p65_p2 = scmp.eq.s32.totalorder %s2320_s30, 0  ;;  %p70_p8 = scmp.ne.s32.totalorder %s2304_s26, %s2300_s25 }
  0x38   : > { %s2910_s24 = smov (%p52_p13, %s50_s24), 0  ;;  %p318_p9 = scmp.eq.s32.totalorder %s2438_s14, 1 }
  0x39   : > { %2869 = sst [smem:[#allocation31_spill]] %s2910_s24  ;;  %p2488_p4 = por %p65_p2, %p64_p0 }
  0x3a   : > { %1851 = dma.hbm_to_vmem [thread:$0]  (!%p2452_p6), %s2868_s5, 1024, %s422_s20, [#allocation16], %s2834_s22, %s2834_s22, %s2836_s23  }
  0x3b   : > { %s54_s20 = ssub.s32 %s2316_s29, %s2910_s24  ;;  %p2499_p11 = por %p2847_p1, %p70_p8 }
  0x3c   : > { %p55_p10 = scmp.eq.s32.totalorder %s54_s20, 0  ;;  %p2503_p12 = por %p318_p9, %p64_p0 }
  0x3d   : > { %p324_p13 = scmp.eq.s32.totalorder %s2839_s17, 1  ;;  %p1879_p5 = scmp.lt.s32.totalorder %s2320_s30, 2 }
  0x3e   : > { %s2872_s21 = scalar_select %p2503_p12, 1, 0 }
  0x3f   : > { %s2510_s22 = scalar_select %p55_p10, %s2308_s27, %s57_s11  }
  0x40   : > { %2873 = sst [smem:[#allocation32_spill]] %s2872_s21  ;;  %p2512_p2 = por %p324_p13, %p70_p8 }
  0x41   : > { %2874 = sst [smem:[#allocation33_spill]] %s2510_s22  ;;  %s2843_s3 = sand.u32 1, %s2308_s27  }
  0x42   : > { %s2875_s23 = scalar_select %p2512_p2, 1, 0 }
  0x43   : > { %s2519_s20 = sshll.u32 %s2316_s29, 7  ;;  %s2523_s5 = sshll.u32 %s2843_s3, 3 }
  0x44   : > { %2876 = sst [smem:[#allocation34_spill]] %s2875_s23  ;;  %p2527_p0 = pnand %p1879_p5, %p2488_p4 }
  0x45   : > { %s478_s11 = sand.u32 1, %s2320_s30   ;;  %s2878_s1 = sld [smem:[#allocation35_spill]] }
  0x46   : > { %s482_s25 = scalar_lea.vmem [#allocation9], %s2523_s5  ;;  %s2537_s10 = scalar_lea.sflag [#allocation10], %s478_s11 }
  0x47   : > { %s490_s29 = sshll.u32 %s482_s25, 4  ;;  %p2849_p8 = pneg %p2527_p0  ;;  %s491_s29 = int_to_ptr.vmem [resolvable:$true] %s490_s29 }
  0x48   : > { %s2049_s16 = scalar_lea.vmem %s491_s29, 128  ;;  %s2326_s3 = smov [#allocation9]  }
  0x49   : > { %p2050_p9 = scmp.ne.s32.totalorder %s491_s29, %s2049_s16  ;;  %s2054_s13 = sshll.u32 %s2326_s3, 4  ;;  %s2055_s13 = int_to_ptr.vmem [resolvable:$false] %s2054_s13 }
  0x4a   : > { %s2056_s30 = scalar_lea.vmem %s2055_s13, 256  ;;  %p2057_p10 = scmp.lt.s32.totalorder %s491_s29, %s2055_s13 }
  0x4b   : > { %s488_s23 = scalar_lea.hbm %s2878_s1, %s2519_s20  ;;  %p2052_p5 = pnand %p2050_p9, %p2849_p8 }
  0x4c   : > { %p2058_p13 = scmp.lt.s32.totalorder %s2056_s30, %s2049_s16 }
  0x4d   : > { %p2053_p4 = pneg %p2052_p5 }
  0x4e   : > { %p2059_p1 = por %p2058_p13, %p2057_p10 }
  0x50   : > { %p2060_p7 = pnand %p2059_p1, %p2053_p4 }
  0x52   : > { %2063 = shalt.err (!%p2060_p7)
}
  0x53   : > { %1861 = dma.hbm_to_vmem [thread:$0]  (!%p2527_p0), %s488_s23, 128, %s491_s29, %s2537_s10  }
  0x54   : > { %s2327_s25 = smov [#allocation14]   ;;  %s2328_s17 = smov [#allocation17]  }
  0x55   : > { %s408_s22 = sshll.u32 %s2327_s25, 4  ;;  %s434_s11 = sshll.u32 %s2328_s17, 4  ;;  %s409_s22 = int_to_ptr.vmem [resolvable:$true] %s408_s22  ;;  %s435_s11 = int_to_ptr.vmem [resolvable:$true] %s434_s11 }
  0x56   : > { %s2075_s1 = scalar_lea.vmem %s409_s22, 1024  ;;  %p2879_p5 = pneg %p2452_p6 }
  0x57   : > { %p2076_p9 = scmp.ne.s32.totalorder %s409_s22, %s2075_s1  ;;  %p2083_p12 = scmp.lt.s32.totalorder %s409_s22, %s409_s22 }
  0x58   : > { %p2084_p10 = scmp.lt.s32.totalorder %s2075_s1, %s2075_s1 }
  0x59   : > { %p2078_p8 = pnand %p2076_p9, %p2879_p5 }
  0x5a   : > { %p2085_p1 = por %p2084_p10, %p2083_p12 }
  0x5b   : > { %p2079_p2 = pneg %p2078_p8 }
  0x5d   : > { %p2086_p7 = pnand %p2085_p1, %p2079_p2 }
  0x5f   : > { %2089 = shalt.err (!%p2086_p7)
}
  0x60   : > { %s2880_s3 = smov 4   ;;  %s2881_s13 = smov 64  }
  0x61   : > { %s2882_s4 = sld [smem:[#allocation37_spill]]  ;;  %s2101_s23 = scalar_lea.vmem %s435_s11, 1024 }
  0x62   : > { %p2102_p4 = scmp.ne.s32.totalorder %s435_s11, %s2101_s23  ;;  %p2883_p8 = pmov %p2879_p5 }
  0x63   : > { %p2109_p12 = scmp.lt.s32.totalorder %s435_s11, %s435_s11  ;;  %p2110_p2 = scmp.lt.s32.totalorder %s2101_s23, %s2101_s23 }
  0x64   : > { %p2104_p13 = pnand %p2102_p4, %p2883_p8 }
  0x65   : > { %p2111_p5 = por %p2110_p2, %p2109_p12 }
  0x66   : > { %p2105_p9 = pneg %p2104_p13 }
  0x67   : > { %1848 = dma.hbm_to_vmem [thread:$0]  (!%p2452_p6), %s2882_s4, 1024, %s409_s22, [#allocation13], %s2881_s13, %s2881_s13, %s2880_s3  }
  0x68   : > { %p2112_p10 = pnand %p2111_p5, %p2105_p9 }
  0x6a   : > { %2115 = shalt.err (!%p2112_p10)
}
  0x6b   : > { %1854 = dma.hbm_to_vmem [thread:$0]  (!%p2452_p6), %s2825_s6, 1024, %s435_s11, [#allocation16], %s2881_s13, %s2881_s13, %s2880_s3  }
  0x6c   : > { %s469_s17 = scalar_lea.hbm %s2819_s0, %s2519_s20  ;;  %s464_s29 = scalar_lea.vmem [#allocation6], %s2523_s5 }
  0x6d   : > { %s471_s30 = sshll.u32 %s464_s29, 4  ;;  %s507_s4 = scalar_lea.hbm %s2821_s2, %s2519_s20  ;;  %s472_s30 = int_to_ptr.vmem [resolvable:$true] %s471_s30 }
  0x6e   : > { %s2884_s12 = sand.u32 1, %s2308_s27   ;;  %s2129_s1 = scalar_lea.vmem %s472_s30, 128 }
  0x6f   : > { %s461_s21 = scalar_lea.sflag [#allocation7], %s2884_s12  ;;  %p2130_p1 = scmp.ne.s32.totalorder %s472_s30, %s2129_s1 }
  0x70   : > { %p2885_p7 = pneg %p2527_p0  ;;  %s2329_s11 = smov [#allocation6]  }
  0x71   : > { %s2134_s3 = sshll.u32 %s2329_s11, 4  ;;  %s2135_s3 = int_to_ptr.vmem [resolvable:$false] %s2134_s3 }
  0x72   : > { %p2132_p4 = pnand %p2130_p1, %p2885_p7  ;;  %s2136_s13 = scalar_lea.vmem %s2135_s3, 256 }
  0x73   : > { %p2137_p6 = scmp.lt.s32.totalorder %s472_s30, %s2135_s3  ;;  %p2138_p13 = scmp.lt.s32.totalorder %s2136_s13, %s2129_s1 }
  0x74   : > { %p2133_p8 = pneg %p2132_p4 }
  0x75   : > { %p2139_p9 = por %p2138_p13, %p2137_p6 }
  0x77   : > { %p2140_p12 = pnand %p2139_p9, %p2133_p8 }
  0x79   : > { %2143 = shalt.err (!%p2140_p12)
}
  0x7a   : > { %1858 = dma.hbm_to_vmem [thread:$0]  (!%p2527_p0), %s469_s17, 128, %s472_s30, %s461_s21  }
  0x7b   : > { %s501_s12 = scalar_lea.vmem [#allocation11], %s2523_s5  ;;  %p2886_p5 = pmov %p2885_p7 }
  0x7c   : > { %s509_s16 = sshll.u32 %s501_s12, 4  ;;  %s2330_s22 = smov [#allocation11]   ;;  %s510_s16 = int_to_ptr.vmem [resolvable:$true] %s509_s16 }
  0x7d   : > { %s2157_s25 = scalar_lea.vmem %s510_s16, 128  ;;  %s2162_s29 = sshll.u32 %s2330_s22, 4  ;;  %s2163_s29 = int_to_ptr.vmem [resolvable:$false] %s2162_s29 }
  0x7e   : > { %p2158_p2 = scmp.ne.s32.totalorder %s510_s16, %s2157_s25  ;;  %s2164_s18 = scalar_lea.vmem %s2163_s29, 256 }
  0x7f   : > { %p2165_p7 = scmp.lt.s32.totalorder %s510_s16, %s2163_s29  ;;  %p2166_p4 = scmp.lt.s32.totalorder %s2164_s18, %s2157_s25 }
  0x80   : > { %p2160_p10 = pnand %p2158_p2, %p2886_p5 }
  0x81   : > { %p2167_p8 = por %p2166_p4, %p2165_p7 }
  0x82   : > { %p2161_p1 = pneg %p2160_p10 }
  0x84   : > { %p2168_p6 = pnand %p2167_p8, %p2161_p1 }
  0x86   : > { %2171 = shalt.err (!%p2168_p6)
}
  0x87   : > { %1864 = dma.hbm_to_vmem [thread:$0]  (!%p2527_p0), %s507_s4, 128, %s510_s16, %s2537_s10  }
  0x88   : > { %518 = sbr.rel (%p2443_p3) target bundleno = 1726 (0x6be), region = 64  ;;  %s2600_s17 = sand.u32 (!%p2443_p3), 1, %s2304_s26  }
  0x89   : > { %s2603_s30 = sshll.u32 (!%p2443_p3), %s2600_s17, 3  ;;  %s521_s24 = scalar_lea.sflag (!%p2443_p3), [#allocation7], %s2600_s17 }
  0x8a   : > { %s524_s23 = scalar_lea.vmem (!%p2443_p3), [#allocation6], %s2603_s30 }
  0x8d   : > { %2275 = dma.done.wait (%p2499_p11), %s521_s24, 128  }
  0x8e   : > { %2277 = vsyncadd (%p2499_p11), %s521_s24, 4294967168  ;;  %s529_s4 = sand.u32 1, %s2438_s14   ;;  %s533_s15 = scalar_lea.vmem [#allocation9], %s2603_s30 }
  0x8f   : > { %s530_s10 = scalar_lea.sflag [#allocation10], %s529_s4 }
  0x90   : > { %2279 = dma.done.wait (%p2499_p11), %s530_s10, 256  }
  0x91   : > { %2281 = vsyncadd (%p2499_p11), %s530_s10, 4294967040  ;;  %s542_s20 = scalar_lea.vmem [#allocation11], %s2603_s30  ;;  %p2887_p3 = scmp.eq.s32.totalorder %s2438_s14, 0 }
  0x93   : > { %2283 = dma.done.wait (%p2887_p3), [#allocation13], 2048   ;;  %p2888_p0 = pmov %p2887_p3 }
  0x95   : > { %2285 = vsyncadd (%p2888_p0), [#allocation13], 4294965248  ;;  %p2889_p13 = pmov %p2888_p0 }
  0x96   : > { %p2890_p9 = pmov %p2888_p0 }
  0x97   : > { %2287 = dma.done.wait (%p2889_p13), [#allocation16], 2048  }
  0x98   : > { %2289 = vsyncadd (%p2890_p9), [#allocation16], 4294965248  ;;  %v2331_v0 = vmov 0.0   ;;  %vm2332_vm0 = vmmov 0   ;;  %v1944_v1 = vld [vmem:[#allocation12 + $0x38] sm:$0xff]   ;;  %v1946_v3 = vld [vmem:[#allocation12 + $0x30] sm:$0xff]  }
  0x99   : > { %1710 = vmatprep.subr.bf16.mxu0 %v2331_v0  ;;  %1730 = vmatprep.subr.bf16.mxu1 %v2331_v0  ;;  %v1945_v2 = vld [vmem:[#allocation14 + $0x38] sm:$0xff]   ;;  %v1947_v4 = vld [vmem:[#allocation14 + $0x30] sm:$0xff]   ;;  %v1948_v5 = vld [vmem:[#allocation12 + $0x28] sm:$0xff]   ;;  %s613_s13 = scalar_lea.vmem [#allocation19], %s2603_s30  ;;  %vm1008_vm1 = vcmask 64512   ;;  %vm1025_vm2 = vcmask 1043456  }
  0x9a   : > { %1726 = vmatprep.mubr.msk.bf16.mxu0 %vm2332_vm0, %v2331_v0  ;;  %1746 = vmatprep.mubr.msk.bf16.mxu1 %vm2332_vm0, %v2331_v0  ;;  %v1949_v6 = vld [vmem:[#allocation14 + $0x28] sm:$0xff]   ;;  %v1950_v7 = vld [vmem:[#allocation12 + $0x20] sm:$0xff]   ;;  %v1952_v9 = vld [vmem:[#allocation12 + $0x18] sm:$0xff]   ;;  %s620_s25 = scalar_lea.vmem [#allocation21], %s2603_s30  ;;  %vm1015_vm3 = vcmask 7168   ;;  %s2891_s22 = sld [smem:[#allocation32_spill]] }
  0x9b   : > { %1711 = vmatpush3.bf16.msra.mxu0 %v1944_v1  ;;  %1731 = vmatpush3.bf16.msra.mxu1 %v1945_v2  ;;  %v1951_v8 = vld [vmem:[#allocation14 + $0x20] sm:$0xff]   ;;  %v1953_v10 = vld [vmem:[#allocation14 + $0x18] sm:$0xff]   ;;  %v1954_v11 = vld [vmem:[#allocation12 + $0x10] sm:$0xff]   ;;  %s2717_s29 = sshll.u32 %s2312_s28, 7  ;;  %s1360_s18 = sshll.u32 %s613_s13, 4  ;;  %s1361_s18 = int_to_ptr.vmem [resolvable:$true] %s1360_s18 }
  0x9c   : > { %1712 = vmatprep.subr.bf16.mxu0 %v2331_v0  ;;  %1732 = vmatprep.subr.bf16.mxu1 %v2331_v0  ;;  %v1955_v12 = vld [vmem:[#allocation14 + $0x10] sm:$0xff]   ;;  %v1956_v13 = vld [vmem:[#allocation12 + $0x8] sm:$0xff]   ;;  %v1958_v15 = vld [vmem:[#allocation12] sm:$0xff]   ;;  %s2892_s24 = sld [smem:[#allocation41_spill]]  ;;  %s1373_s10 = sshll.u32 %s620_s25, 4  ;;  %s1374_s10 = int_to_ptr.vmem [resolvable:$true] %s1373_s10 }
  0x9d   : > { %v1957_v14 = vld [vmem:[#allocation14 + $0x8] sm:$0xff]   ;;  %v626_v16 = vld [vmem:[%s524_s23] sm:$0xff]  ;;  %v1959_v17 = vld [vmem:[#allocation14] sm:$0xff]   ;;  %s2334_s28 = smov [#allocation19]  }
  0x9e   : > { %v627_v18 = vpack.c.bf16 %v626_v16, %v626_v16  ;;  %v1960_v19 = vld [vmem:[#allocation15 + $0x38] sm:$0xff]   ;;  %v1961_v20 = vld [vmem:[#allocation15 + $0x30] sm:$0xff]   ;;  %v1962_v21 = vld [vmem:[#allocation15 + $0x28] sm:$0xff]   ;;  %s2176_s19 = sshll.u32 %s2334_s28, 4  ;;  %s2177_s19 = int_to_ptr.vmem [resolvable:$false] %s2176_s19 }
  0x9f   : > { %1713 = vmatpush3.bf16.msra.mxu0 %v1946_v3  ;;  %1733 = vmatpush3.bf16.msra.mxu1 %v1947_v4  ;;  %v1963_v22 = vld [vmem:[#allocation15 + $0x20] sm:$0xff]   ;;  %v1964_v23 = vld [vmem:[#allocation15 + $0x18] sm:$0xff]   ;;  %v1965_v24 = vld [vmem:[#allocation15 + $0x10] sm:$0xff]   ;;  %s2178_s1 = scalar_lea.vmem %s2177_s19, 256  ;;  %p2179_p10 = scmp.lt.s32.totalorder %s1361_s18, %s2177_s19 }
  0xa0   : > { %1714 = vmatprep.subr.bf16.mxu0 %v2331_v0  ;;  %1734 = vmatprep.subr.bf16.mxu1 %v2331_v0  ;;  %v1966_v25 = vld [vmem:[#allocation15 + $0x8] sm:$0xff]   ;;  %v1967_v26 = vld [vmem:[#allocation15] sm:$0xff]   ;;  %v1620_v27 = vld [vmem:[%s2826_s7] ss:$0 sm:$0xff]  ;;  %p2893_p12 = scmp.ne.s32.totalorder %s2891_s22, 0 }
  0xa1   : > { %v1629_v28 = vld [vmem:[%s2827_s8] ss:$0 sm:$0xff]  ;;  %v1071_v58 = vld [vmem:[%s533_s15] sm:$0xff]  ;;  %s2729_s15 = scalar_lea.sflag [#allocation20], %s529_s4 }
  0xa2   : > { %v1638_v47 = vld [vmem:[%s2828_s9] ss:$0 sm:$0xff]  ;;  %v1072_v60 = vpack.c.bf16 %v1071_v58, %v1071_v58  ;;  %s1358_s23 = scalar_lea.hbm %s2892_s24, %s2717_s29 }
  0xa3   : > { %1715 = vmatpush3.bf16.msra.mxu0 %v1948_v5  ;;  %1735 = vmatpush3.bf16.msra.mxu1 %v1949_v6 }
  0xa4   : > { %1716 = vmatprep.subr.bf16.mxu0 %v2331_v0  ;;  %1736 = vmatprep.subr.bf16.mxu1 %v2331_v0 }
  0xa7   : > { %1717 = vmatpush3.bf16.msra.mxu0 %v1950_v7  ;;  %1737 = vmatpush3.bf16.msra.mxu1 %v1951_v8 }
  0xa8   : > { %1718 = vmatprep.subr.bf16.mxu0 %v2331_v0  ;;  %1738 = vmatprep.subr.bf16.mxu1 %v2331_v0 }
  0xab   : > { %1719 = vmatpush3.bf16.msra.mxu0 %v1952_v9  ;;  %1739 = vmatpush3.bf16.msra.mxu1 %v1953_v10  ;;  %v2333_v9 = vmov 0  }
  0xac   : > { %1720 = vmatprep.subr.bf16.mxu0 %v2331_v0  ;;  %1740 = vmatprep.subr.bf16.mxu1 %v2331_v0 }
  0xad   : > { %1942 = vset.pattern.permute.xlu1 %v2333_v9  ;;  %1943 = vset.pattern.permute.xlu0 %v2333_v9 }
  0xaf   : > { %1721 = vmatpush3.bf16.msra.mxu0 %v1954_v11  ;;  %1741 = vmatpush3.bf16.msra.mxu1 %v1955_v12 }
  0xb0   : > { %1722 = vmatprep.subr.bf16.mxu0 %v2331_v0  ;;  %1742 = vmatprep.subr.bf16.mxu1 %v2331_v0 }
  0xb3   : > { %1723 = vmatpush3.bf16.msra.mxu0 %v1956_v13  ;;  %1743 = vmatpush3.bf16.msra.mxu1 %v1957_v14  ;;  %v1073_v14 = vld [vmem:[%s542_s20] sm:$0xff]  ;;  %s2172_s20 = scalar_lea.vmem %s1361_s18, 128 }
  0xb4   : > { %1724 = vmatprep.subr.bf16.mxu0 %v2331_v0  ;;  %1744 = vmatprep.subr.bf16.mxu1 %v2331_v0  ;;  %p2173_p11 = scmp.ne.s32.totalorder %s1361_s18, %s2172_s20  ;;  %p2180_p1 = scmp.lt.s32.totalorder %s2178_s1, %s2172_s20 }
  0xb6   : > { %p2174_p2 = pnand %p2173_p11, %p2893_p12  ;;  %p2181_p7 = por %p2180_p1, %p2179_p10 }
  0xb7   : > { %1725 = vmatpush3.bf16.msra.mxu0 %v1958_v15  ;;  %1745 = vmatpush3.bf16.msra.mxu1 %v1959_v17  ;;  %v1074_v15 = vpack.c.bf16 %v1073_v14, %v1073_v14 }
  0xb8   : > { %1750 = vmatprep.subr.bf16.mxu0 %v2331_v0  ;;  %1770 = vmatprep.subr.bf16.mxu1 %v2331_v0  ;;  %p2175_p5 = pneg %p2174_p2 }
  0xb9   : > { %v1153_v16 = vsel %vm1025_vm2, %v1074_v15, 0 }
  0xba   : > { %1727 = vmatmul.mubr.bf16.vlgmr.msra.gmra.mxu0 %v627_v18  ;;  %1747 = vmatmul.mubr.bf16.vlgmr.msra.gmra.mxu1 %v627_v18  ;;  %p2182_p4 = pnand %p2181_p7, %p2175_p5 }
  0xbb   : > { %1766 = vmatprep.mubr.msk.bf16.mxu0 %vm2332_vm0, %v2331_v0  ;;  %1772 = vmatprep.mubr.msk.bf16.mxu1 %vm2332_vm0, %v2331_v0 }
  0xbc   : > { %1751 = vmatpush3.bf16.msra.mxu0 %v1960_v19 }
  0xbd   : > { %1752 = vmatprep.subr.bf16.mxu0 %v2331_v0 }
  0xc0   : > { %1753 = vmatpush3.bf16.msra.mxu0 %v1961_v20 }
  0xc1   : > { %1754 = vmatprep.subr.bf16.mxu0 %v2331_v0 }
  0xc4   : > { %1755 = vmatpush3.bf16.msra.mxu0 %v1962_v21 }
  0xc5   : > { %1756 = vmatprep.subr.bf16.mxu0 %v2331_v0 }
  0xc8   : > { %1757 = vmatpush3.bf16.msra.mxu0 %v1963_v22 }
  0xc9   : > { %1758 = vmatprep.subr.bf16.mxu0 %v2331_v0 }
  0xcc   : > { %1759 = vmatpush3.bf16.msra.mxu0 %v1964_v23 }
  0xcd   : > { %1760 = vmatprep.subr.bf16.mxu0 %v2331_v0 }
  0xd0   : > { %1761 = vmatpush3.bf16.msra.mxu0 %v1965_v24 }
  0xd1   : > { %1762 = vmatprep.subr.bf16.mxu0 %v2331_v0 }
  0xd4   : > { %1763 = vmatpush3.bf16.msra.mxu0 %v1966_v25 }
  0xd5   : > { %1764 = vmatprep.subr.bf16.mxu0 %v2331_v0 }
  0xd8   : > { %1765 = vmatpush3.bf16.msra.mxu0 %v1967_v26 }
  0xd9   : > { %1794 = vmatprep.subr.bf16.mxu0 %v2331_v0 }
  0xdb   : > { %1767 = vmatmul.mubr.bf16.vlgmr.msra.gmra.mxu0 %v627_v18 }
  0xdc   : > { %1810 = vmatprep.mubr.msk.bf16.mxu0 %vm2332_vm0, %v2331_v0 }
 0x17a   : > { %v733_v29 = vpop.f32.mrf.mxu0  ;;  %v844_v31 = vpop.f32.mrf.mxu1 }
 0x17b   : > { %v734_v30 = vadd.f32 %v1620_v27, %v733_v29  ;;  %v845_v32 = vadd.f32 %v1629_v28, %v844_v31  ;;  %v1968_v27 = vld [vmem:[#allocation17 + $0x38] sm:$0xff]   ;;  %v1969_v28 = vld [vmem:[#allocation17 + $0x30] sm:$0xff]   ;;  %v1970_v29 = vld [vmem:[#allocation17 + $0x28] sm:$0xff]  }
 0x17c   : > { %v1728_v33 = vpop.f32.mrf.mxu0  ;;  %v1748_v35 = vpop.f32.mrf.mxu1  ;;  %1795 = vmatpush3.bf16.msra.mxu0 %v1968_v27  ;;  %v1972_v31 = vld [vmem:[#allocation17 + $0x18] sm:$0xff]  }
 0x17d   : > { %v963_v34 = vmul.f32 0.088388346, %v734_v30  ;;  %961 = vst [vmem:[%s613_s13] sm:$0xff] %v845_v32  ;;  %v965_v36 = vpack.c.bf16 %v845_v32, %v845_v32  ;;  %1796 = vmatprep.subr.bf16.mxu0 %v2331_v0  ;;  %v1971_v30 = vld [vmem:[#allocation17 + $0x20] sm:$0xff]   ;;  %v1973_v32 = vld [vmem:[#allocation17 + $0x10] sm:$0xff]   ;;  %v1974_v33 = vld [vmem:[#allocation17 + $0x8] sm:$0xff]  }
 0x17e   : > { %v736_v37 = vpop.f32.mrf.mxu0  ;;  %v847_v39 = vpop.f32.mrf.mxu1 }
 0x17f   : > { %v964_v38 = vpack.c.bf16 %v963_v34, %v963_v34  ;;  %1771 = vmatpush3.bf16.xpose.msra.mxu1 %v965_v36  ;;  %v1975_v39 = vld [vmem:[#allocation17] sm:$0xff]  }
 0x180   : > { %v1729_v40 = vpop.f32.mrf.mxu0  ;;  %v1749_v41 = vpop.f32.mrf.mxu1  ;;  %1776 = vmatprep.subr.bf16.mxu1 %v2331_v0  ;;  %1797 = vmatpush3.bf16.msra.mxu0 %v1969_v28 }
 0x181   : > { %967 = vst [vmem:[#allocation2] sm:$0xf] %v964_v38  ;;  %1798 = vmatprep.subr.bf16.mxu0 %v2331_v0 }
 0x184   : > { %1799 = vmatpush3.bf16.msra.mxu0 %v1970_v29 }
 0x185   : > { %1800 = vmatprep.subr.bf16.mxu0 %v2331_v0 }
 0x186   : > { %1773 = vmatmul.mubr.bf16.vlgmr.msra.gmra.mxu1 %v964_v38 }
 0x187   : > { %1778 = vmatprep.mubr.msk.bf16.mxu1 %vm2332_vm0, %v2331_v0 }
 0x188   : > { %v1070_v62 = vld [vmem:[#allocation2] sm:$0xf]  ;;  %1801 = vmatpush3.bf16.msra.mxu0 %v1971_v30 }
 0x189   : > { %1802 = vmatprep.subr.bf16.mxu0 %v2331_v0 }
 0x18c   : > { %1803 = vmatpush3.bf16.msra.mxu0 %v1972_v31 }
 0x18d   : > { %1804 = vmatprep.subr.bf16.mxu0 %v2331_v0 }
 0x190   : > { %1805 = vmatpush3.bf16.msra.mxu0 %v1973_v32 }
 0x191   : > { %1806 = vmatprep.subr.bf16.mxu0 %v2331_v0 }
 0x194   : > { %1807 = vmatpush3.bf16.msra.mxu0 %v1974_v33 }
 0x195   : > { %1808 = vmatprep.subr.bf16.mxu0 %v2331_v0 }
 0x198   : > { %1809 = vmatpush3.bf16.msra.mxu0 %v1975_v39 }
 0x19b   : > { %v955_v48 = vpop.f32.mrf.mxu0 }
 0x19c   : > { %v956_v49 = vadd.f32 %v1638_v47, %v955_v48 }
 0x19d   : > { %v1768_v50 = vpop.f32.mrf.mxu0 }
 0x19e   : > { %962 = vst [vmem:[%s620_s25] sm:$0xff] %v956_v49  ;;  %v966_v51 = vpack.c.bf16 %v956_v49, %v956_v49 }
 0x19f   : > { %v958_v52 = vpop.f32.mrf.mxu0 }
 0x1a0   : > { %v1027_v53 = vsel %vm1025_vm2, %v966_v51, 0 }
 0x1a1   : > { %v1769_v54 = vpop.f32.mrf.mxu0  ;;  %1777 = vmatpush3.bf16.msra.mxu1 %v1027_v53 }
 0x1a2   : > { %1782 = vmatprep.subr.bf16.mxu1 %v2331_v0 }
 0x246   : > { %v1002_v42 = vpop.f32.mrf.mxu1 }
 0x247   : > { %v1009_v43 = vsel %vm1008_vm1, %v1002_v42, -inf }
 0x248   : > { %1010 = vmax.xlane.f32.xlu0 %v1009_v43  ;;  %v1774_v44 = vpop.f32.mrf.mxu1 }
 0x24a   : > { %v1005_v45 = vpop.f32.mrf.mxu1 }
 0x24c   : > { %v1775_v46 = vpop.f32.mrf.mxu1 }
 0x2d1   : > { %v1011_v55 = vpop.xlane.xlu0 %1010 }
 0x2d2   : > { %v1012_v56 = vsub.f32 %v1002_v42, %v1011_v55  ;;  %1016 = vst.msk [vmem:[#allocation3] sm:$0xff] %vm1015_vm3, %v1011_v55 }
 0x2d4   : > { %v1013_v57 = vmul.f32 1.442695, %v1012_v56 }
 0x2d6   : > { %1976 = vpow2.f32 %v1013_v57 }
 0x2d9   : > { %v1115_v10 = vld [vmem:[#allocation3] sm:$0xff] }
 0x2e3   : > { %v1977_v59 = vpop.eup %1976 }
 0x2e4   : > { %v1021_v61 = vpack.c.bf16 %v1977_v59, %v1977_v59  ;;  %v1017_v17 = vsel %vm1008_vm1, %v1977_v59, 0.0 }
 0x2e6   : > { %1779 = vmatmul.mubr.msk.bf16.vlgmr.msra.gmra.mxu1 %vm1008_vm1, %v1021_v61 }
 0x2e7   : > { %1783 = vmatpush3.bf16.xpose.msra.mxu1 %v1072_v60  ;;  %1784 = vmatprep.mubr.msk.bf16.mxu1 %vm2332_vm0, %v2331_v0 }
 0x2e8   : > { %1788 = vmatprep.subr.bf16.mxu1 %v2331_v0 }
 0x2ee   : > { %1785 = vmatmul.mubr.bf16.vlgmr.msra.gmra.mxu1 %v1070_v62 }
 0x2ef   : > { %1790 = vmatprep.mubr.msk.bf16.mxu1 %vm2332_vm0, %v2331_v0  ;;  %1789 = vmatpush3.bf16.msra.mxu1 %v1153_v16 }
 0x3a6   : > { %v2696_v63 = vpop.f32.mrf.mxu1 }
 0x3a8   : > { %v1780_v1 = vpop.f32.mrf.mxu1 }
 0x3aa   : > { %v1066_v2 = vpop.f32.mrf.mxu1 }
 0x3ac   : > { %v1781_v3 = vpop.f32.mrf.mxu1 }
 0x3ae   : > { %v1109_v4 = vpop.f32.mrf.mxu1 }
 0x3af   : > { %v1117_v5 = vsel %vm1008_vm1, %v1109_v4, -inf }
 0x3b0   : > { %1118 = vmax.xlane.f32.xlu0 %v1117_v5  ;;  %v1786_v6 = vpop.f32.mrf.mxu1 }
 0x3b2   : > { %v1112_v7 = vpop.f32.mrf.mxu1 }
 0x3b4   : > { %v1787_v8 = vpop.f32.mrf.mxu1 }
 0x439   : > { %v1119_v11 = vpop.xlane.xlu0 %1118 }
 0x43a   : > { %v1120_v12 = vmax.f32 %v1115_v10, %v1119_v11 }
 0x43c   : > { %v1121_v13 = vsub.f32 %v1115_v10, %v1120_v12  ;;  %1197 = vst.msk [vmem:[#allocation3] sm:$0xff] %vm1015_vm3, %v1120_v12  ;;  %1126 = vperm.xlu1 %1942, %v1120_v12  }
 0x43e   : > { %v1122_v24 = vmul.f32 1.442695, %v1121_v13 }
 0x460   : > { %1018 = vadd.xlane.f32.xlu1 %v1017_v17 }
 0x4b7   : > { %v1127_v18 = vpop.permute.xlu1 %1126 }
 0x4b8   : > { %v1129_v19 = vsub.f32 %v1109_v4, %v1127_v18 }
 0x4ba   : > { %v1130_v20 = vmul.f32 1.442695, %v1129_v19 }
 0x4bc   : > { %1978 = vpow2.f32 %v1130_v20 }
 0x4bd   : > { %1980 = vpow2.f32 %v1122_v24 }
 0x4c9   : > { %v1979_v21 = vpop.eup %1978 }
 0x4ca   : > { %v1134_v22 = vsel %vm1008_vm1, %v1979_v21, 0.0  ;;  %v1147_v23 = vpack.c.bf16 %v1979_v21, %v1979_v21  ;;  %v1981_v25 = vpop.eup %1980 }
 0x4cb   : > { %1135 = vadd.xlane.f32.xlu0 %v1134_v22 }
 0x4cc   : > { %1791 = vmatmul.mubr.msk.bf16.vlgmr.msra.gmra.mxu1 %vm1008_vm1, %v1147_v23 }
 0x4e1   : > { %1143 = vperm.xlu0 %1943, %v1981_v25  }
 0x4e9   : > { %v1019_v26 = vpop.xlane.xlu1 %1018 }
 0x4ea   : > { %1020 = vst.msk [vmem:[#allocation4] sm:$0xff] %vm1015_vm3, %v1019_v26 }
 0x4f1   : > { %v1132_v34 = vld [vmem:[#allocation4] sm:$0xff] }
 0x4f2   : > { %v1133_v35 = vmul.f32 %v1981_v25, %v1132_v34 }
 0x554   : > { %v1136_v36 = vpop.xlane.xlu0 %1135 }
 0x555   : > { %v1137_v37 = vadd.f32 %v1136_v36, %v1133_v35 }
 0x557   : > { %1139 = vst.msk [vmem:[#allocation4] sm:$0xff] %vm1015_vm3, %v1137_v37 }
 0x55c   : > { %v1144_v44 = vpop.permute.xlu0 %1143 }
 0x55d   : > { %v1146_v45 = vmul.f32 %v1144_v44, %v2696_v63 }
 0x55e   : > { %v1202_v38 = vld [vmem:[#allocation4] sm:$0xff] }
 0x55f   : > { %1982 = vrcp.f32 %v1202_v38 }
 0x56c   : > { %v1983_v40 = vpop.eup %1982 }
 0x56d   : > { %1206 = vperm.xlu1 %1942, %v1983_v40  }
 0x58c   : > { %v1189_v41 = vpop.f32.mrf.mxu1 }
 0x58d   : > { %v1195_v46 = vadd.f32 %v1189_v41, %v1146_v45 }
 0x58e   : > { %v1792_v42 = vpop.f32.mrf.mxu1 }
 0x590   : > { %v1192_v43 = vpop.f32.mrf.mxu1 }
 0x592   : > { %v1793_v0 = vpop.f32.mrf.mxu1 }
 0x5e8   : > { %v1207_v47 = vpop.permute.xlu1 %1206 }
 0x5e9   : > { %v1209_v48 = vmul.f32 %v1207_v47, %v1195_v46 }
 0x5eb   : > { %v1210_v49 = vpack.c.bf16 %v1209_v48, %v1209_v48 }
 0x5ed   : > { %1811 = vmatmul.mubr.bf16.vlgmr.msra.gmra.mxu0 %v1210_v49 }
 0x5ee   : > { %2185 = shalt.err (!%p2182_p4)
}
 0x5ef   : > { %s2186_s11 = scalar_lea.hbm %s1358_s23, 128  ;;  %s2190_s3 = scalar_lea.hbm %s2892_s24, 256 }
 0x5f0   : > { %p2187_p8 = scmp.ne.s32.totalorder %s1358_s23, %s2186_s11  ;;  %p2191_p0 = scmp.lt.s32.totalorder %s1358_s23, %s2892_s24 }
 0x5f1   : > { %p2192_p13 = scmp.lt.s32.totalorder %s2190_s3, %s2186_s11 }
 0x5f2   : > { %p2188_p6 = pnand %p2187_p8, %p2893_p12 }
 0x5f3   : > { %p2193_p9 = por %p2192_p13, %p2191_p0 }
 0x5f4   : > { %p2189_p3 = pneg %p2188_p6 }
 0x5f6   : > { %p2194_p11 = pnand %p2193_p9, %p2189_p3 }
 0x5f8   : > { %2197 = shalt.err (!%p2194_p11)
}
 0x5f9   : > { %1837 = dma.vmem_to_hbm [thread:$0]  (%p2893_p12), %s1361_s18, 128, %s1358_s23, %s2729_s15  }
 0x5fa   : > { %s2894_s5 = sld [smem:[#allocation42_spill]]  ;;  %s2198_s20 = scalar_lea.vmem %s1374_s10, 128 }
 0x5fb   : > { %p2199_p2 = scmp.ne.s32.totalorder %s1374_s10, %s2198_s20  ;;  %s2335_s28 = smov [#allocation21]  }
 0x5fc   : > { %s2202_s19 = sshll.u32 %s2335_s28, 4  ;;  %s2203_s19 = int_to_ptr.vmem [resolvable:$false] %s2202_s19 }
 0x5fd   : > { %p2200_p5 = pnand %p2199_p2, %p2893_p12  ;;  %s2204_s1 = scalar_lea.vmem %s2203_s19, 256 }
 0x5fe   : > { %p2205_p1 = scmp.lt.s32.totalorder %s1374_s10, %s2203_s19  ;;  %p2206_p7 = scmp.lt.s32.totalorder %s2204_s1, %s2198_s20 }
 0x5ff   : > { %p2201_p10 = pneg %p2200_p5 }
 0x600   : > { %s1371_s21 = scalar_lea.hbm %s2894_s5, %s2717_s29  ;;  %p2207_p4 = por %p2206_p7, %p2205_p1 }
 0x602   : > { %p2208_p8 = pnand %p2207_p4, %p2201_p10 }
 0x604   : > { %2211 = shalt.err (!%p2208_p8)
}
 0x605   : > { %s2212_s18 = scalar_lea.hbm %s1371_s21, 128  ;;  %s2216_s14 = scalar_lea.hbm %s2894_s5, 256 }
 0x606   : > { %p2213_p6 = scmp.ne.s32.totalorder %s1371_s21, %s2212_s18  ;;  %p2217_p13 = scmp.lt.s32.totalorder %s1371_s21, %s2894_s5 }
 0x607   : > { %p2218_p9 = scmp.lt.s32.totalorder %s2216_s14, %s2212_s18 }
 0x608   : > { %p2214_p3 = pnand %p2213_p6, %p2893_p12 }
 0x609   : > { %p2219_p11 = por %p2218_p9, %p2217_p13 }
 0x60a   : > { %p2215_p0 = pneg %p2214_p3 }
 0x60c   : > { %p2220_p2 = pnand %p2219_p11, %p2215_p0 }
 0x60e   : > { %2223 = shalt.err (!%p2220_p2)
}
 0x60f   : > { %1838 = dma.vmem_to_hbm [thread:$0]  (%p2893_p12), %s1374_s10, 128, %s1371_s21, %s2729_s15  }
 0x610   : > { %s2895_s16 = sld [smem:[#allocation39_spill]]  ;;  %s606_s25 = scalar_lea.vmem [#allocation18], %s2603_s30 }
 0x611   : > { %s1347_s20 = sshll.u32 %s606_s25, 4  ;;  %s2896_s1 = sld [smem:[#allocation40_spill]]  ;;  %s2771_s20 = int_to_ptr.vmem [resolvable:$true] %s1347_s20 }
 0x612   : > { %s1324_s10 = scalar_lea.sflag [#allocation8], %s2600_s17  ;;  %s2224_s15 = scalar_lea.vmem %s2771_s20, 128 }
 0x613   : > { %p2225_p5 = scmp.ne.s32.totalorder %s2771_s20, %s2224_s15  ;;  %s2336_s30 = smov [#allocation18]  }
 0x614   : > { %s2228_s21 = sshll.u32 %s2336_s30, 4  ;;  %s2229_s21 = int_to_ptr.vmem [resolvable:$false] %s2228_s21 }
 0x615   : > { %p2226_p10 = pnand %p2225_p5, %p2893_p12  ;;  %s2230_s23 = scalar_lea.vmem %s2229_s21, 256 }
 0x616   : > { %v1649_v50 = vld [vmem:[%s2895_s16] ss:$0 sm:$0xff]  ;;  %p2231_p7 = scmp.lt.s32.totalorder %s2771_s20, %s2229_s21  ;;  %p2232_p4 = scmp.lt.s32.totalorder %s2230_s23, %s2224_s15 }
 0x617   : > { %s2769_s18 = scalar_lea.hbm %s2896_s1, %s2717_s29  ;;  %p2227_p1 = pneg %p2226_p10 }
 0x618   : > { %p2233_p8 = por %p2232_p4, %p2231_p7 }
 0x61a   : > { %p2234_p6 = pnand %p2233_p8, %p2227_p1 }
 0x6ad   : > { %v1316_v51 = vpop.f32.mrf.mxu0 }
 0x6ae   : > { %v1317_v52 = vadd.f32 %v1649_v50, %v1316_v51 }
 0x6af   : > { %v1812_v53 = vpop.f32.mrf.mxu0 }
 0x6b0   : > { %1322 = vst [vmem:[%s606_s25] sm:$0xff] %v1317_v52 }
 0x6b1   : > { %v1319_v54 = vpop.f32.mrf.mxu0 }
 0x6b2   : > { %2237 = shalt.err (!%p2234_p6)
}
 0x6b3   : > { %s2238_s29 = scalar_lea.hbm %s2769_s18, 128  ;;  %s2242_s14 = scalar_lea.hbm %s2896_s1, 256 }
 0x6b4   : > { %p2239_p3 = scmp.ne.s32.totalorder %s2769_s18, %s2238_s29  ;;  %p2243_p9 = scmp.lt.s32.totalorder %s2769_s18, %s2896_s1 }
 0x6b5   : > { %p2244_p11 = scmp.lt.s32.totalorder %s2242_s14, %s2238_s29 }
 0x6b6   : > { %p2240_p0 = pnand %p2239_p3, %p2893_p12 }
 0x6b7   : > { %p2245_p2 = por %p2244_p11, %p2243_p9 }
 0x6b8   : > { %p2241_p13 = pneg %p2240_p0 }
 0x6ba   : > { %p2246_p5 = pnand %p2245_p2, %p2241_p13 }
 0x6bc   : > { %2249 = shalt.err (!%p2246_p5)
}
 0x6bd   : > { %1836 = dma.vmem_to_hbm [thread:$0]  (%p2893_p12), %s2771_s20, 128, %s2769_s18, %s1324_s10   ;;  %v1813_v55 = vpop.f32.mrf.mxu0 }
 0x6be PF: > { %s2897_s13 = sld [smem:[#allocation28_spill]] }
 0x6bf   : > { %s2898_s12 = sld [smem:[#allocation34_spill]] }
 0x6c0   : > { %s2899_s16 = sld [smem:[#allocation30_spill]] }
 0x6c4   : > { %s1385_s25 = sand.u32 1, %s2897_s13  }
 0x6c5   : > { %p2900_p10 = scmp.ne.s32.totalorder %s2898_s12, 0  ;;  %s1386_s28 = scalar_lea.sflag [#allocation8], %s1385_s25 }
 0x6c6   : > { %p2901_p1 = scmp.ge.s32.totalorder %s2899_s16, 2 }
 0x6c8   : > { %p1866_p7 = pnand %p2901_p1, %p2900_p10 }
 0x6ca   : > { %p1867_p4 = pneg %p1866_p7 }
 0x6cc   : > { %2291 = dma.done.wait (%p1867_p4), %s1386_s28, 128  }
 0x6cd   : > { %2293 = vsyncadd (%p1867_p4), %s1386_s28, 4294967168  ;;  %s2902_s19 = sadd.s32 4294967294, %s2899_s16  }
 0x6ce   : > { %s1394_s15 = sand.u32 1, %s2902_s19  }
 0x6cf   : > { %s1395_s22 = scalar_lea.sflag [#allocation20], %s1394_s15 }
 0x6d0   : > { %2295 = dma.done.wait (%p1867_p4), %s1395_s22, 256  }
 0x6d1   : > { %2297 = vsyncadd (%p1867_p4), %s1395_s22, 4294967040  ;;  %s38_s30 = sadd.s32 1, %s2899_s16   ;;  %s2903_s20 = sld [smem:[#allocation33_spill]] }
 0x6d2   : > { %p35_p12 = scmp.ge.s32.totalorder %s38_s30, 4   ;;  %s2904_s28 = sld [smem:[#allocation29_spill]] }
 0x6d3   : > { %s2905_s29 = sld [smem:[#allocation31_spill]]  ;;  %s2906_s25 = smov %s2304_s26 }
 0x6d4   : > { %s2907_s26 = smov %s2308_s27  ;;  %37 = sbr.rel (!%p35_p12) target bundleno = 21 (0x15), region = 189 }
 0x6d7   : > { %s2908_s27 = smov %s2903_s20 }
 0x6d9   :  { %1409 = vsyncpa [#allocation7], 1 }
 0x6da   :  { %1411 = vsyncpa [#allocation7 + $0x1], 1 }
 0x6db   :  { %1412 = vsyncpa [#allocation10], 1 }
 0x6dc   :  { %1414 = vsyncpa [#allocation10 + $0x1], 1 }
 0x6dd   :  { %1415 = vsyncpa [#allocation13], 1 }
 0x6de   :  { %1416 = vsyncpa [#allocation16], 1 }
 0x6df   :  { %1417 = vsyncpa [#allocation8], 1 }
 0x6e0   :  { %1419 = vsyncpa [#allocation8 + $0x1], 1 }
 0x6e1   :  { %1420 = vsyncpa [#allocation20], 1 }
 0x6e2   :  { %1422 = vsyncpa [#allocation20 + $0x1], 1 }

</bundles_post_ra>
